<compile_context>
chip_gen: v5e
topology: v5e:2x2
jax: 0.10.0
libtpu: 0.0.40
codegen_flags: <defaults>
</compile_context>

<pallas_src>
import math
import functools

import jax
import jax.numpy as jnp
from jax.experimental import pallas as pl
from jax.experimental.pallas import tpu as pltpu


def _mha_ln_kernel(q_ref, kv_ref,
                   wq_ref, wkv_ref, wo_ref,
                   bq_ref, bkv_ref, bo_ref,
                   gamma_ref, beta_ref,
                   out_ref, att_ref,
                   o_slab_ref, att_acc_ref,
                   *, num_heads, eps):
    TB, Sq, E = q_ref.shape
    Skv = kv_ref.shape[1]
    hd = E // num_heads
    scale = 1.0 / math.sqrt(hd)

    # Query rows: f32 kept only for the residual, bf16 transient for the MXU.
    xq_f32 = q_ref[...].astype(jnp.float32).reshape(TB * Sq, E)
    xq_b = xq_f32.astype(jnp.bfloat16)
    # Key/value rows are only ever a matmul operand -> bf16 immediately.
    xkv_b = kv_ref[...].astype(jnp.bfloat16).reshape(TB * Skv, E)

    wq = wq_ref[...].astype(jnp.bfloat16)          # (E, E)
    wkv = wkv_ref[...].astype(jnp.bfloat16)        # (E, 2E)
    wo = wo_ref[...].astype(jnp.bfloat16)          # (E, E)

    # Projections: q (scale folded once, bias included as in PyTorch), fused k|v.
    q = (jnp.dot(xq_b, wq, preferred_element_type=jnp.float32) + bq_ref[...]) * scale
    kv = jnp.dot(xkv_b, wkv, preferred_element_type=jnp.float32) + bkv_ref[...]

    q3 = q.reshape(TB, Sq, E).astype(jnp.bfloat16)             # (TB, Sq, E)
    k3 = kv[:, :E].astype(jnp.bfloat16).reshape(TB, Skv, E)    # (TB, Skv, E)
    v3 = kv[:, E:].astype(jnp.bfloat16).reshape(TB, Skv, E)    # (TB, Skv, E)

    # Per-head attention, batched over the TB fused batch elements.  Each head's
    # context is written into the (rows, E) VMEM slab at its lane offset; the
    # attention probabilities accumulate into a VMEM scratch ref.
    for h in range(num_heads):
        lo = h * hd
        qh = q3[:, :, lo:lo + hd]                  # (TB, Sq, hd)  bf16
        kh = k3[:, :, lo:lo + hd]                  # (TB, Skv, hd) bf16
        vh = v3[:, :, lo:lo + hd]                  # (TB, Skv, hd) bf16

        s = jnp.einsum('tqd,tkd->tqk', qh, kh,
                       preferred_element_type=jnp.float32)     # (TB, Sq, Skv) f32
        s = s - jnp.max(s, axis=-1, keepdims=True)
        p = jnp.exp(s)
        inv_l = pl.reciprocal(jnp.sum(p, axis=-1, keepdims=True), approx=False)
        p = p * inv_l                                          # softmax, f32

        if h == 0:
            att_acc_ref[...] = p
        else:
            att_acc_ref[...] = att_acc_ref[...] + p

        o_h = jnp.einsum('tqk,tkd->tqd', p.astype(jnp.bfloat16), vh,
                         preferred_element_type=jnp.float32)   # (TB, Sq, hd) f32
        o_slab_ref[:, lo:lo + hd] = o_h.reshape(TB * Sq, hd)

    # One full-contraction output projection + bias + residual.
    o = o_slab_ref[...].astype(jnp.bfloat16)                   # (TB*Sq, E)
    y = jnp.dot(o, wo, preferred_element_type=jnp.float32) + bo_ref[...]
    r = y + xq_f32

    # LayerNorm exactly as the custom PyTorch module: torch.std is unbiased (ddof=1)
    # and eps is added to std (not variance).  Divide replaced by per-row reciprocal.
    mean = jnp.mean(r, axis=-1, keepdims=True)
    var = jnp.sum((r - mean) ** 2, axis=-1, keepdims=True) * (1.0 / (E - 1))
    inv = pl.reciprocal(jnp.sqrt(var) + eps, approx=False)
    normed = gamma_ref[...] * ((r - mean) * inv) + beta_ref[...]

    out_ref[...] = normed.reshape(TB, Sq, E).astype(out_ref.dtype)
    att_ref[...] = (att_acc_ref[...] * (1.0 / num_heads)).astype(att_ref.dtype)


def _block_vmem_bytes(tb, Sq, Skv, E, att_bytes):
    """Rough per-grid-step VMEM footprint (double-buffered I/O + weights + scratch
    + live intermediates)."""
    f32, bf16 = 4, 2
    io_in = 2 * (tb * Sq * E + tb * Skv * E) * f32
    io_out = 2 * (tb * Sq * E * f32 + tb * Sq * Skv * att_bytes)
    weights = 2 * ((E * E + E * 2 * E + E * E) * f32 + 8 * E * f32)
    scratch = tb * Sq * E * f32 + tb * Sq * Skv * f32
    live = (3 * tb * Sq * E * f32 + 2 * tb * Skv * E * bf16
            + tb * Sq * E * bf16 + 3 * tb * Sq * Skv * f32)
    return io_in + io_out + weights + scratch + live


def _pick_block_b(B, Sq, Skv, E, att_bytes, *,
                  target_rows=512, vmem_budget=40 << 20, min_grid=2):
    """Largest divisor of B such that fused rows stay near `target_rows`, the block
    fits the VMEM budget, and (for v7x megacore) the grid has >= min_grid steps."""
    longest = max(Sq, Skv)
    row_target = max(1, target_rows // longest)
    best = 1
    for tb in range(1, B + 1):
        if B % tb:
            continue
        if tb > row_target:
            break
        if _block_vmem_bytes(tb, Sq, Skv, E, att_bytes) > vmem_budget:
            break
        if B >= min_grid and (B // tb) < min_grid:
            break
        best = tb
    return best


def multihead_attention_forward(inp, query, params, *, num_heads, eps=1e-5,
                                block_b=None, att_dtype=jnp.float32):
    """inp, query: (B, S, E) batch-major.  Returns (embed (B,Sq,E), att (B,Sq,Skv)).

    att_dtype: use jnp.bfloat16 on v5e to halve the dominant HBM writeback stream."""
    B, Sq, E = query.shape
    Skv = inp.shape[1]
    att_bytes = jnp.dtype(att_dtype).itemsize

    if block_b is None:
        block_b = _pick_block_b(B, Sq, Skv, E, att_bytes)
    assert B % block_b == 0
    nb = B // block_b

    # Host-side fusion of the K/V projection weights -> single (E,2E) matmul in-kernel.
    wkv = jnp.concatenate([params["wk"], params["wv"]], axis=1)    # (E, 2E)
    bkv = jnp.concatenate([params["bk"], params["bv"]], axis=1)    # (1, 2E)

    kernel = functools.partial(_mha_ln_kernel, num_heads=num_heads, eps=eps)

    w_spec = pl.BlockSpec((E, E), lambda b: (0, 0))
    wkv_spec = pl.BlockSpec((E, 2 * E), lambda b: (0, 0))
    vec_spec = pl.BlockSpec((1, E), lambda b: (0, 0))
    bkv_spec = pl.BlockSpec((1, 2 * E), lambda b: (0, 0))

    est_vmem = _block_vmem_bytes(block_b, Sq, Skv, E, att_bytes)
    vmem_limit = int(min(100 << 20, max(32 << 20, 2 * est_vmem)))

    # Advisory cost for XLA's scheduler around the custom call.
    flops = 2 * B * (Sq * E * E + 2 * Skv * E * E + Sq * E * E) + 4 * B * Sq * Skv * E
    transcendentals = B * num_heads * Sq * Skv
    bytes_accessed = (4 * (2 * B * Sq * E + B * Skv * E)
                      + att_bytes * B * Sq * Skv
                      + 4 * (4 * E * E + 8 * E))
    cost = pl.CostEstimate(flops=int(flops),
                           transcendentals=int(transcendentals),
                           bytes_accessed=int(bytes_accessed))

    embed, att = pl.pallas_call(
        kernel,
        out_shape=(jax.ShapeDtypeStruct((B, Sq, E), query.dtype),
                   jax.ShapeDtypeStruct((B, Sq, Skv), att_dtype)),
        grid=(nb,),
        in_specs=[
            pl.BlockSpec((block_b, Sq, E), lambda b: (b, 0, 0)),    # query
            pl.BlockSpec((block_b, Skv, E), lambda b: (b, 0, 0)),   # input (key/value)
            w_spec, wkv_spec, w_spec,                               # Wq, Wkv, Wo
            vec_spec, bkv_spec, vec_spec,                           # bq, bkv, bo
            vec_spec, vec_spec,                                     # gamma, beta
        ],
        out_specs=(pl.BlockSpec((block_b, Sq, E), lambda b: (b, 0, 0)),
                   pl.BlockSpec((block_b, Sq, Skv), lambda b: (b, 0, 0))),
        scratch_shapes=[
            pltpu.VMEM((block_b * Sq, E), jnp.float32),      # per-head context slab
            pltpu.VMEM((block_b, Sq, Skv), jnp.float32),     # attention-weight accumulator
        ],
        compiler_params=pltpu.CompilerParams(
            dimension_semantics=("parallel",),
            vmem_limit_bytes=vmem_limit),
        cost_estimate=cost,
    )(query, inp,
      params["wq"], wkv, params["wo"],
      params["bq"], bkv, params["bo"],
      params["gamma"], params["beta"])
    return embed, att


def _reference(inp, query, params, *, num_heads, eps=1e-5):
    """Pure-JAX f32 reference mirroring nn.MultiheadAttention + residual + LayerNorm."""
    B, Sq, E = query.shape
    Skv = inp.shape[1]
    hd = E // num_heads
    scale = 1.0 / math.sqrt(hd)

    q = query @ params["wq"] + params["bq"]
    k = inp @ params["wk"] + params["bk"]
    v = inp @ params["wv"] + params["bv"]

    def split(t, S):
        return t.reshape(B, S, num_heads, hd).transpose(0, 2, 1, 3)  # (B,H,S,hd)

    qh, kh, vh = split(q, Sq), split(k, Skv), split(v, Skv)
    s = jnp.einsum("bhqd,bhkd->bhqk", qh * scale, kh)
    p = jax.nn.softmax(s, axis=-1)
    o = jnp.einsum("bhqk,bhkd->bhqd", p, vh)
    o = o.transpose(0, 2, 1, 3).reshape(B, Sq, E)
    y = o @ params["wo"] + params["bo"]
    r = y + query
    mean = jnp.mean(r, axis=-1, keepdims=True)
    std = jnp.sqrt(jnp.sum((r - mean) ** 2, axis=-1, keepdims=True) / (E - 1))
    embed = params["gamma"] * (r - mean) / (std + eps) + params["beta"]
    att = jnp.mean(p, axis=1)  # average over heads -> (B, Sq, Skv)
    return embed, att


if __name__ == "__main__":
    B, Sq, Skv, E, H = 2, 8, 8, 32, 4

    key = jax.random.PRNGKey(0)
    k_in, k_q, kwq, kwk, kwv, kwo, kbq, kbk, kbv, kbo = jax.random.split(key, 10)

    inp = jax.random.normal(k_in, (B, Skv, E), dtype=jnp.float32)      # key/value source
    query = jax.random.normal(k_q, (B, Sq, E), dtype=jnp.float32)

    lim = 1.0 / math.sqrt(E)  # deterministic synthetic init
    params = {
        "wq": jax.random.uniform(kwq, (E, E), jnp.float32, -lim, lim),
        "wk": jax.random.uniform(kwk, (E, E), jnp.float32, -lim, lim),
        "wv": jax.random.uniform(kwv, (E, E), jnp.float32, -lim, lim),
        "wo": jax.random.uniform(kwo, (E, E), jnp.float32, -lim, lim),
        "bq": jax.random.uniform(kbq, (1, E), jnp.float32, -lim, lim),
        "bk": jax.random.uniform(kbk, (1, E), jnp.float32, -lim, lim),
        "bv": jax.random.uniform(kbv, (1, E), jnp.float32, -lim, lim),
        "bo": jax.random.uniform(kbo, (1, E), jnp.float32, -lim, lim),
        "gamma": jnp.ones((1, E), jnp.float32),   # LayerNorm a_2
        "beta": jnp.zeros((1, E), jnp.float32),   # LayerNorm b_2
    }

    embed, att = multihead_attention_forward(inp, query, params, num_heads=H)
    jax.block_until_ready((embed, att))

    embed_ref, att_ref = _reference(inp, query, params, num_heads=H)
    assert embed.shape == (B, Sq, E) and att.shape == (B, Sq, Skv)
    # bf16 MXU matmuls vs. an all-f32 reference -> relaxed tolerance.
    assert jnp.allclose(embed, embed_ref, atol=2e-2, rtol=2e-2)
    assert jnp.allclose(att, att_ref, atol=2e-2, rtol=2e-2)

    print("KERNEL_OK")
</pallas_src>

<mosaic_0001>
module attributes {stable_mosaic.version = 11 : i64} {
  func.func @_mha_ln_kernel(%arg0: i32, %arg1: memref<1x8x32xf32, #tpu.memory_space<vmem>>, %arg2: memref<1x8x32xf32, #tpu.memory_space<vmem>>, %arg3: memref<32x32xf32, #tpu.memory_space<vmem>>, %arg4: memref<32x64xf32, #tpu.memory_space<vmem>>, %arg5: memref<32x32xf32, #tpu.memory_space<vmem>>, %arg6: memref<1x32xf32, #tpu.memory_space<vmem>>, %arg7: memref<1x64xf32, #tpu.memory_space<vmem>>, %arg8: memref<1x32xf32, #tpu.memory_space<vmem>>, %arg9: memref<1x32xf32, #tpu.memory_space<vmem>>, %arg10: memref<1x32xf32, #tpu.memory_space<vmem>>, %arg11: memref<1x8x32xf32, #tpu.memory_space<vmem>>, %arg12: memref<1x8x8xf32, #tpu.memory_space<vmem>>, %arg13: memref<8x32xf32, #tpu.memory_space<vmem>>, %arg14: memref<1x8x8xf32, #tpu.memory_space<vmem>>) attributes {dimension_semantics = [#tpu.dimension_semantics<parallel>], iteration_bounds = array<i64: 2>, scalar_prefetch = 0 : i64, scratch_operands = 2 : i64, tpu.core_type = #tpu.core_type<tc>, window_params = [{transform_indices = @transform_0, window_bounds = array<i64: 1, 8, 32>}, {transform_indices = @transform_1, window_bounds = array<i64: 1, 8, 32>}, {pipeline_mode = #tpu.pipeline_mode<synchronous>, transform_indices = @transform_2, window_bounds = array<i64: 32, 32>}, {pipeline_mode = #tpu.pipeline_mode<synchronous>, transform_indices = @transform_3, window_bounds = array<i64: 32, 64>}, {pipeline_mode = #tpu.pipeline_mode<synchronous>, transform_indices = @transform_4, window_bounds = array<i64: 32, 32>}, {pipeline_mode = #tpu.pipeline_mode<synchronous>, transform_indices = @transform_5, window_bounds = array<i64: 1, 32>}, {pipeline_mode = #tpu.pipeline_mode<synchronous>, transform_indices = @transform_6, window_bounds = array<i64: 1, 64>}, {pipeline_mode = #tpu.pipeline_mode<synchronous>, transform_indices = @transform_7, window_bounds = array<i64: 1, 32>}, {pipeline_mode = #tpu.pipeline_mode<synchronous>, transform_indices = @transform_8, window_bounds = array<i64: 1, 32>}, {pipeline_mode = #tpu.pipeline_mode<synchronous>, transform_indices = @transform_9, window_bounds = array<i64: 1, 32>}, {transform_indices = @transform_10, window_bounds = array<i64: 1, 8, 32>}, {transform_indices = @transform_11, window_bounds = array<i64: 1, 8, 8>}]} {
    %c0 = arith.constant 0 : index
    %c0_0 = arith.constant 0 : index
    %c0_1 = arith.constant 0 : index
    %0 = vector.load %arg1[%c0, %c0_0, %c0_1] : memref<1x8x32xf32, #tpu.memory_space<vmem>>, vector<1x8x32xf32>
    %1 = vector.shape_cast %0 : vector<1x8x32xf32> to vector<8x32xf32>
    %2 = arith.truncf %1 : vector<8x32xf32> to vector<8x32xbf16>
    %c0_2 = arith.constant 0 : index
    %c0_3 = arith.constant 0 : index
    %c0_4 = arith.constant 0 : index
    %3 = vector.load %arg2[%c0_2, %c0_3, %c0_4] : memref<1x8x32xf32, #tpu.memory_space<vmem>>, vector<1x8x32xf32>
    %4 = arith.truncf %3 : vector<1x8x32xf32> to vector<1x8x32xbf16>
    %5 = vector.shape_cast %4 : vector<1x8x32xbf16> to vector<8x32xbf16>
    %c0_5 = arith.constant 0 : index
    %c0_6 = arith.constant 0 : index
    %6 = vector.load %arg3[%c0_5, %c0_6] : memref<32x32xf32, #tpu.memory_space<vmem>>, vector<32x32xf32>
    %7 = arith.truncf %6 : vector<32x32xf32> to vector<32x32xbf16>
    %c0_7 = arith.constant 0 : index
    %c0_8 = arith.constant 0 : index
    %8 = vector.load %arg4[%c0_7, %c0_8] : memref<32x64xf32, #tpu.memory_space<vmem>>, vector<32x64xf32>
    %9 = arith.truncf %8 : vector<32x64xf32> to vector<32x64xbf16>
    %c0_9 = arith.constant 0 : index
    %c0_10 = arith.constant 0 : index
    %10 = vector.load %arg5[%c0_9, %c0_10] : memref<32x32xf32, #tpu.memory_space<vmem>>, vector<32x32xf32>
    %11 = arith.truncf %10 : vector<32x32xf32> to vector<32x32xbf16>
    %cst = arith.constant dense<0.000000e+00> : vector<8x32xf32>
    %12 = tpu.matmul %2, %7, %cst {dimension_numbers = #tpu.dot_dimension_numbers<[1], [0], [0], [1], [0, 0, 1, 1], [], []>} : vector<8x32xbf16>, vector<32x32xbf16>, vector<8x32xf32> -> vector<8x32xf32>
    %c0_11 = arith.constant 0 : index
    %c0_12 = arith.constant 0 : index
    %13 = vector.load %arg6[%c0_11, %c0_12] : memref<1x32xf32, #tpu.memory_space<vmem>>, vector<1x32xf32>
    %14 = vector.broadcast %13 : vector<1x32xf32> to vector<8x32xf32>
    %15 = arith.addf %12, %14 : vector<8x32xf32>
    %cst_13 = arith.constant 0.353553385 : f32
    %16 = vector.broadcast %cst_13 : f32 to vector<8x32xf32>
    %17 = arith.mulf %15, %16 : vector<8x32xf32>
    %cst_14 = arith.constant dense<0.000000e+00> : vector<8x64xf32>
    %18 = tpu.matmul %5, %9, %cst_14 {dimension_numbers = #tpu.dot_dimension_numbers<[1], [0], [0], [1], [0, 0, 1, 1], [], []>} : vector<8x32xbf16>, vector<32x64xbf16>, vector<8x64xf32> -> vector<8x64xf32>
    %c0_15 = arith.constant 0 : index
    %c0_16 = arith.constant 0 : index
    %19 = vector.load %arg7[%c0_15, %c0_16] : memref<1x64xf32, #tpu.memory_space<vmem>>, vector<1x64xf32>
    %20 = vector.broadcast %19 : vector<1x64xf32> to vector<8x64xf32>
    %21 = arith.addf %18, %20 : vector<8x64xf32>
    %22 = vector.shape_cast %17 : vector<8x32xf32> to vector<1x8x32xf32>
    %23 = arith.truncf %22 : vector<1x8x32xf32> to vector<1x8x32xbf16>
    %24 = vector.extract_strided_slice %21 {offsets = [0, 0], sizes = [8, 32], strides = [1, 1]} : vector<8x64xf32> to vector<8x32xf32>
    %25 = arith.truncf %24 : vector<8x32xf32> to vector<8x32xbf16>
    %26 = vector.shape_cast %25 : vector<8x32xbf16> to vector<1x8x32xbf16>
    %27 = vector.extract_strided_slice %21 {offsets = [0, 32], sizes = [8, 32], strides = [1, 1]} : vector<8x64xf32> to vector<8x32xf32>
    %28 = arith.truncf %27 : vector<8x32xf32> to vector<8x32xbf16>
    %29 = vector.shape_cast %28 : vector<8x32xbf16> to vector<1x8x32xbf16>
    %30 = vector.extract_strided_slice %23 {offsets = [0, 0, 0], sizes = [1, 8, 8], strides = [1, 1, 1]} : vector<1x8x32xbf16> to vector<1x8x8xbf16>
    %31 = vector.extract_strided_slice %26 {offsets = [0, 0, 0], sizes = [1, 8, 8], strides = [1, 1, 1]} : vector<1x8x32xbf16> to vector<1x8x8xbf16>
    %32 = vector.extract_strided_slice %29 {offsets = [0, 0, 0], sizes = [1, 8, 8], strides = [1, 1, 1]} : vector<1x8x32xbf16> to vector<1x8x8xbf16>
    "tpu.trace_start"() <{level = 10 : i32, message = "tqd,tkd->tqk"}> : () -> ()
    %cst_17 = arith.constant dense<0.000000e+00> : vector<1x8x8xf32>
    %33 = tpu.matmul %30, %31, %cst_17 {dimension_numbers = #tpu.dot_dimension_numbers<[2], [2], [1], [1], [0, 0, 0, 1, 1, 1], [0], [0]>} : vector<1x8x8xbf16>, vector<1x8x8xbf16>, vector<1x8x8xf32> -> vector<1x8x8xf32>
    "tpu.trace_stop"() : () -> ()
    %cst_18 = arith.constant dense<0xFF800000> : vector<1x8xf32>
    %34 = vector.multi_reduction <maximumf>, %33, %cst_18 [2] : vector<1x8x8xf32> to vector<1x8xf32>
    %35 = vector.shape_cast %34 : vector<1x8xf32> to vector<1x8x1xf32>
    %36 = vector.broadcast %35 : vector<1x8x1xf32> to vector<1x8x8xf32>
    %37 = arith.subf %33, %36 : vector<1x8x8xf32>
    %38 = math.exp %37 : vector<1x8x8xf32>
    %cst_19 = arith.constant dense<0.000000e+00> : vector<1x8xf32>
    %39 = vector.multi_reduction <add>, %38, %cst_19 [2] : vector<1x8x8xf32> to vector<1x8xf32>
    %40 = vector.shape_cast %39 : vector<1x8xf32> to vector<1x8x1xf32>
    %41 = tpu.reciprocal %40 : vector<1x8x1xf32> -> vector<1x8x1xf32>
    %42 = vector.broadcast %41 : vector<1x8x1xf32> to vector<1x8x8xf32>
    %43 = arith.mulf %38, %42 : vector<1x8x8xf32>
    %c0_20 = arith.constant 0 : index
    %c0_21 = arith.constant 0 : index
    %c0_22 = arith.constant 0 : index
    %44 = vector.load %arg14[%c0_20, %c0_21, %c0_22] : memref<1x8x8xf32, #tpu.memory_space<vmem>>, vector<1x8x8xf32>
    tpu.vector_store %arg14[%c0_20, %c0_21, %c0_22], %43 {strides = array<i32>} : memref<1x8x8xf32, #tpu.memory_space<vmem>>, vector<1x8x8xf32>,
    %45 = arith.truncf %43 : vector<1x8x8xf32> to vector<1x8x8xbf16>
    "tpu.trace_start"() <{level = 10 : i32, message = "tqk,tkd->tqd"}> : () -> ()
    %cst_23 = arith.constant dense<0.000000e+00> : vector<1x8x8xf32>
    %46 = tpu.matmul %45, %32, %cst_23 {dimension_numbers = #tpu.dot_dimension_numbers<[2], [1], [1], [2], [0, 0, 0, 1, 1, 2], [0], [0]>} : vector<1x8x8xbf16>, vector<1x8x8xbf16>, vector<1x8x8xf32> -> vector<1x8x8xf32>
    "tpu.trace_stop"() : () -> ()
    %47 = vector.shape_cast %46 : vector<1x8x8xf32> to vector<8x8xf32>
    %c0_24 = arith.constant 0 : index
    %c0_25 = arith.constant 0 : index
    %48 = vector.load %arg13[%c0_24, %c0_25] : memref<8x32xf32, #tpu.memory_space<vmem>>, vector<8x8xf32>
    tpu.vector_store %arg13[%c0_24, %c0_25], %47 {strides = array<i32>} : memref<8x32xf32, #tpu.memory_space<vmem>>, vector<8x8xf32>,
    %49 = vector.extract_strided_slice %23 {offsets = [0, 0, 8], sizes = [1, 8, 8], strides = [1, 1, 1]} : vector<1x8x32xbf16> to vector<1x8x8xbf16>
    %50 = vector.extract_strided_slice %26 {offsets = [0, 0, 8], sizes = [1, 8, 8], strides = [1, 1, 1]} : vector<1x8x32xbf16> to vector<1x8x8xbf16>
    %51 = vector.extract_strided_slice %29 {offsets = [0, 0, 8], sizes = [1, 8, 8], strides = [1, 1, 1]} : vector<1x8x32xbf16> to vector<1x8x8xbf16>
    "tpu.trace_start"() <{level = 10 : i32, message = "tqd,tkd->tqk"}> : () -> ()
    %cst_26 = arith.constant dense<0.000000e+00> : vector<1x8x8xf32>
    %52 = tpu.matmul %49, %50, %cst_26 {dimension_numbers = #tpu.dot_dimension_numbers<[2], [2], [1], [1], [0, 0, 0, 1, 1, 1], [0], [0]>} : vector<1x8x8xbf16>, vector<1x8x8xbf16>, vector<1x8x8xf32> -> vector<1x8x8xf32>
    "tpu.trace_stop"() : () -> ()
    %cst_27 = arith.constant dense<0xFF800000> : vector<1x8xf32>
    %53 = vector.multi_reduction <maximumf>, %52, %cst_27 [2] : vector<1x8x8xf32> to vector<1x8xf32>
    %54 = vector.shape_cast %53 : vector<1x8xf32> to vector<1x8x1xf32>
    %55 = vector.broadcast %54 : vector<1x8x1xf32> to vector<1x8x8xf32>
    %56 = arith.subf %52, %55 : vector<1x8x8xf32>
    %57 = math.exp %56 : vector<1x8x8xf32>
    %cst_28 = arith.constant dense<0.000000e+00> : vector<1x8xf32>
    %58 = vector.multi_reduction <add>, %57, %cst_28 [2] : vector<1x8x8xf32> to vector<1x8xf32>
    %59 = vector.shape_cast %58 : vector<1x8xf32> to vector<1x8x1xf32>
    %60 = tpu.reciprocal %59 : vector<1x8x1xf32> -> vector<1x8x1xf32>
    %61 = vector.broadcast %60 : vector<1x8x1xf32> to vector<1x8x8xf32>
    %62 = arith.mulf %57, %61 : vector<1x8x8xf32>
    %c0_29 = arith.constant 0 : index
    %c0_30 = arith.constant 0 : index
    %c0_31 = arith.constant 0 : index
    %63 = vector.load %arg14[%c0_29, %c0_30, %c0_31] : memref<1x8x8xf32, #tpu.memory_space<vmem>>, vector<1x8x8xf32>
    %64 = arith.addf %63, %62 : vector<1x8x8xf32>
    %c0_32 = arith.constant 0 : index
    %c0_33 = arith.constant 0 : index
    %c0_34 = arith.constant 0 : index
    %65 = vector.load %arg14[%c0_32, %c0_33, %c0_34] : memref<1x8x8xf32, #tpu.memory_space<vmem>>, vector<1x8x8xf32>
    tpu.vector_store %arg14[%c0_32, %c0_33, %c0_34], %64 {strides = array<i32>} : memref<1x8x8xf32, #tpu.memory_space<vmem>>, vector<1x8x8xf32>,
    %66 = arith.truncf %62 : vector<1x8x8xf32> to vector<1x8x8xbf16>
    "tpu.trace_start"() <{level = 10 : i32, message = "tqk,tkd->tqd"}> : () -> ()
    %cst_35 = arith.constant dense<0.000000e+00> : vector<1x8x8xf32>
    %67 = tpu.matmul %66, %51, %cst_35 {dimension_numbers = #tpu.dot_dimension_numbers<[2], [1], [1], [2], [0, 0, 0, 1, 1, 2], [0], [0]>} : vector<1x8x8xbf16>, vector<1x8x8xbf16>, vector<1x8x8xf32> -> vector<1x8x8xf32>
    "tpu.trace_stop"() : () -> ()
    %68 = vector.shape_cast %67 : vector<1x8x8xf32> to vector<8x8xf32>
    %c0_36 = arith.constant 0 : index
    %c8 = arith.constant 8 : index
    %69 = vector.load %arg13[%c0_36, %c8] : memref<8x32xf32, #tpu.memory_space<vmem>>, vector<8x8xf32>
    tpu.vector_store %arg13[%c0_36, %c8], %68 {strides = array<i32>} : memref<8x32xf32, #tpu.memory_space<vmem>>, vector<8x8xf32>,
    %70 = vector.extract_strided_slice %23 {offsets = [0, 0, 16], sizes = [1, 8, 8], strides = [1, 1, 1]} : vector<1x8x32xbf16> to vector<1x8x8xbf16>
    %71 = vector.extract_strided_slice %26 {offsets = [0, 0, 16], sizes = [1, 8, 8], strides = [1, 1, 1]} : vector<1x8x32xbf16> to vector<1x8x8xbf16>
    %72 = vector.extract_strided_slice %29 {offsets = [0, 0, 16], sizes = [1, 8, 8], strides = [1, 1, 1]} : vector<1x8x32xbf16> to vector<1x8x8xbf16>
    "tpu.trace_start"() <{level = 10 : i32, message = "tqd,tkd->tqk"}> : () -> ()
    %cst_37 = arith.constant dense<0.000000e+00> : vector<1x8x8xf32>
    %73 = tpu.matmul %70, %71, %cst_37 {dimension_numbers = #tpu.dot_dimension_numbers<[2], [2], [1], [1], [0, 0, 0, 1, 1, 1], [0], [0]>} : vector<1x8x8xbf16>, vector<1x8x8xbf16>, vector<1x8x8xf32> -> vector<1x8x8xf32>
    "tpu.trace_stop"() : () -> ()
    %cst_38 = arith.constant dense<0xFF800000> : vector<1x8xf32>
    %74 = vector.multi_reduction <maximumf>, %73, %cst_38 [2] : vector<1x8x8xf32> to vector<1x8xf32>
    %75 = vector.shape_cast %74 : vector<1x8xf32> to vector<1x8x1xf32>
    %76 = vector.broadcast %75 : vector<1x8x1xf32> to vector<1x8x8xf32>
    %77 = arith.subf %73, %76 : vector<1x8x8xf32>
    %78 = math.exp %77 : vector<1x8x8xf32>
    %cst_39 = arith.constant dense<0.000000e+00> : vector<1x8xf32>
    %79 = vector.multi_reduction <add>, %78, %cst_39 [2] : vector<1x8x8xf32> to vector<1x8xf32>
    %80 = vector.shape_cast %79 : vector<1x8xf32> to vector<1x8x1xf32>
    %81 = tpu.reciprocal %80 : vector<1x8x1xf32> -> vector<1x8x1xf32>
    %82 = vector.broadcast %81 : vector<1x8x1xf32> to vector<1x8x8xf32>
    %83 = arith.mulf %78, %82 : vector<1x8x8xf32>
    %c0_40 = arith.constant 0 : index
    %c0_41 = arith.constant 0 : index
    %c0_42 = arith.constant 0 : index
    %84 = vector.load %arg14[%c0_40, %c0_41, %c0_42] : memref<1x8x8xf32, #tpu.memory_space<vmem>>, vector<1x8x8xf32>
    %85 = arith.addf %84, %83 : vector<1x8x8xf32>
    %c0_43 = arith.constant 0 : index
    %c0_44 = arith.constant 0 : index
    %c0_45 = arith.constant 0 : index
    %86 = vector.load %arg14[%c0_43, %c0_44, %c0_45] : memref<1x8x8xf32, #tpu.memory_space<vmem>>, vector<1x8x8xf32>
    tpu.vector_store %arg14[%c0_43, %c0_44, %c0_45], %85 {strides = array<i32>} : memref<1x8x8xf32, #tpu.memory_space<vmem>>, vector<1x8x8xf32>,
    %87 = arith.truncf %83 : vector<1x8x8xf32> to vector<1x8x8xbf16>
    "tpu.trace_start"() <{level = 10 : i32, message = "tqk,tkd->tqd"}> : () -> ()
    %cst_46 = arith.constant dense<0.000000e+00> : vector<1x8x8xf32>
    %88 = tpu.matmul %87, %72, %cst_46 {dimension_numbers = #tpu.dot_dimension_numbers<[2], [1], [1], [2], [0, 0, 0, 1, 1, 2], [0], [0]>} : vector<1x8x8xbf16>, vector<1x8x8xbf16>, vector<1x8x8xf32> -> vector<1x8x8xf32>
    "tpu.trace_stop"() : () -> ()
    %89 = vector.shape_cast %88 : vector<1x8x8xf32> to vector<8x8xf32>
    %c0_47 = arith.constant 0 : index
    %c16 = arith.constant 16 : index
    %90 = vector.load %arg13[%c0_47, %c16] : memref<8x32xf32, #tpu.memory_space<vmem>>, vector<8x8xf32>
    tpu.vector_store %arg13[%c0_47, %c16], %89 {strides = array<i32>} : memref<8x32xf32, #tpu.memory_space<vmem>>, vector<8x8xf32>,
    %91 = vector.extract_strided_slice %23 {offsets = [0, 0, 24], sizes = [1, 8, 8], strides = [1, 1, 1]} : vector<1x8x32xbf16> to vector<1x8x8xbf16>
    %92 = vector.extract_strided_slice %26 {offsets = [0, 0, 24], sizes = [1, 8, 8], strides = [1, 1, 1]} : vector<1x8x32xbf16> to vector<1x8x8xbf16>
    %93 = vector.extract_strided_slice %29 {offsets = [0, 0, 24], sizes = [1, 8, 8], strides = [1, 1, 1]} : vector<1x8x32xbf16> to vector<1x8x8xbf16>
    "tpu.trace_start"() <{level = 10 : i32, message = "tqd,tkd->tqk"}> : () -> ()
    %cst_48 = arith.constant dense<0.000000e+00> : vector<1x8x8xf32>
    %94 = tpu.matmul %91, %92, %cst_48 {dimension_numbers = #tpu.dot_dimension_numbers<[2], [2], [1], [1], [0, 0, 0, 1, 1, 1], [0], [0]>} : vector<1x8x8xbf16>, vector<1x8x8xbf16>, vector<1x8x8xf32> -> vector<1x8x8xf32>
    "tpu.trace_stop"() : () -> ()
    %cst_49 = arith.constant dense<0xFF800000> : vector<1x8xf32>
    %95 = vector.multi_reduction <maximumf>, %94, %cst_49 [2] : vector<1x8x8xf32> to vector<1x8xf32>
    %96 = vector.shape_cast %95 : vector<1x8xf32> to vector<1x8x1xf32>
    %97 = vector.broadcast %96 : vector<1x8x1xf32> to vector<1x8x8xf32>
    %98 = arith.subf %94, %97 : vector<1x8x8xf32>
    %99 = math.exp %98 : vector<1x8x8xf32>
    %cst_50 = arith.constant dense<0.000000e+00> : vector<1x8xf32>
    %100 = vector.multi_reduction <add>, %99, %cst_50 [2] : vector<1x8x8xf32> to vector<1x8xf32>
    %101 = vector.shape_cast %100 : vector<1x8xf32> to vector<1x8x1xf32>
    %102 = tpu.reciprocal %101 : vector<1x8x1xf32> -> vector<1x8x1xf32>
    %103 = vector.broadcast %102 : vector<1x8x1xf32> to vector<1x8x8xf32>
    %104 = arith.mulf %99, %103 : vector<1x8x8xf32>
    %c0_51 = arith.constant 0 : index
    %c0_52 = arith.constant 0 : index
    %c0_53 = arith.constant 0 : index
    %105 = vector.load %arg14[%c0_51, %c0_52, %c0_53] : memref<1x8x8xf32, #tpu.memory_space<vmem>>, vector<1x8x8xf32>
    %106 = arith.addf %105, %104 : vector<1x8x8xf32>
    %c0_54 = arith.constant 0 : index
    %c0_55 = arith.constant 0 : index
    %c0_56 = arith.constant 0 : index
    %107 = vector.load %arg14[%c0_54, %c0_55, %c0_56] : memref<1x8x8xf32, #tpu.memory_space<vmem>>, vector<1x8x8xf32>
    tpu.vector_store %arg14[%c0_54, %c0_55, %c0_56], %106 {strides = array<i32>} : memref<1x8x8xf32, #tpu.memory_space<vmem>>, vector<1x8x8xf32>,
    %108 = arith.truncf %104 : vector<1x8x8xf32> to vector<1x8x8xbf16>
    "tpu.trace_start"() <{level = 10 : i32, message = "tqk,tkd->tqd"}> : () -> ()
    %cst_57 = arith.constant dense<0.000000e+00> : vector<1x8x8xf32>
    %109 = tpu.matmul %108, %93, %cst_57 {dimension_numbers = #tpu.dot_dimension_numbers<[2], [1], [1], [2], [0, 0, 0, 1, 1, 2], [0], [0]>} : vector<1x8x8xbf16>, vector<1x8x8xbf16>, vector<1x8x8xf32> -> vector<1x8x8xf32>
    "tpu.trace_stop"() : () -> ()
    %110 = vector.shape_cast %109 : vector<1x8x8xf32> to vector<8x8xf32>
    %c0_58 = arith.constant 0 : index
    %c24 = arith.constant 24 : index
    %111 = vector.load %arg13[%c0_58, %c24] : memref<8x32xf32, #tpu.memory_space<vmem>>, vector<8x8xf32>
    tpu.vector_store %arg13[%c0_58, %c24], %110 {strides = array<i32>} : memref<8x32xf32, #tpu.memory_space<vmem>>, vector<8x8xf32>,
    %c0_59 = arith.constant 0 : index
    %c0_60 = arith.constant 0 : index
    %112 = vector.load %arg13[%c0_59, %c0_60] : memref<8x32xf32, #tpu.memory_space<vmem>>, vector<8x32xf32>
    %113 = arith.truncf %112 : vector<8x32xf32> to vector<8x32xbf16>
    %cst_61 = arith.constant dense<0.000000e+00> : vector<8x32xf32>
    %114 = tpu.matmul %113, %11, %cst_61 {dimension_numbers = #tpu.dot_dimension_numbers<[1], [0], [0], [1], [0, 0, 1, 1], [], []>} : vector<8x32xbf16>, vector<32x32xbf16>, vector<8x32xf32> -> vector<8x32xf32>
    %c0_62 = arith.constant 0 : index
    %c0_63 = arith.constant 0 : index
    %115 = vector.load %arg8[%c0_62, %c0_63] : memref<1x32xf32, #tpu.memory_space<vmem>>, vector<1x32xf32>
    %116 = vector.broadcast %115 : vector<1x32xf32> to vector<8x32xf32>
    %117 = arith.addf %114, %116 : vector<8x32xf32>
    %118 = arith.addf %117, %1 : vector<8x32xf32>
    %cst_64 = arith.constant dense<0.000000e+00> : vector<8xf32>
    %119 = vector.multi_reduction <add>, %118, %cst_64 [1] : vector<8x32xf32> to vector<8xf32>
    %120 = vector.shape_cast %119 : vector<8xf32> to vector<8x1xf32>
    %cst_65 = arith.constant 3.200000e+01 : f32
    %121 = vector.broadcast %cst_65 : f32 to vector<8x1xf32>
    %122 = arith.divf %120, %121 : vector<8x1xf32>
    %123 = vector.broadcast %122 : vector<8x1xf32> to vector<8x32xf32>
    %124 = arith.subf %118, %123 : vector<8x32xf32>
    %125 = arith.mulf %124, %124 : vector<8x32xf32>
    %cst_66 = arith.constant dense<0.000000e+00> : vector<8xf32>
    %126 = vector.multi_reduction <add>, %125, %cst_66 [1] : vector<8x32xf32> to vector<8xf32>
    %127 = vector.shape_cast %126 : vector<8xf32> to vector<8x1xf32>
    %cst_67 = arith.constant 0.0322580636 : f32
    %128 = vector.broadcast %cst_67 : f32 to vector<8x1xf32>
    %129 = arith.mulf %127, %128 : vector<8x1xf32>
    %130 = math.sqrt %129 : vector<8x1xf32>
    %cst_68 = arith.constant 9.99999974E-6 : f32
    %131 = vector.broadcast %cst_68 : f32 to vector<8x1xf32>
    %132 = arith.addf %130, %131 : vector<8x1xf32>
    %133 = tpu.reciprocal %132 : vector<8x1xf32> -> vector<8x1xf32>
    %c0_69 = arith.constant 0 : index
    %c0_70 = arith.constant 0 : index
    %134 = vector.load %arg9[%c0_69, %c0_70] : memref<1x32xf32, #tpu.memory_space<vmem>>, vector<1x32xf32>
    %135 = vector.broadcast %122 : vector<8x1xf32> to vector<8x32xf32>
    %136 = arith.subf %118, %135 : vector<8x32xf32>
    %137 = vector.broadcast %133 : vector<8x1xf32> to vector<8x32xf32>
    %138 = arith.mulf %136, %137 : vector<8x32xf32>
    %139 = vector.broadcast %134 : vector<1x32xf32> to vector<8x32xf32>
    %140 = arith.mulf %139, %138 : vector<8x32xf32>
    %c0_71 = arith.constant 0 : index
    %c0_72 = arith.constant 0 : index
    %141 = vector.load %arg10[%c0_71, %c0_72] : memref<1x32xf32, #tpu.memory_space<vmem>>, vector<1x32xf32>
    %142 = vector.broadcast %141 : vector<1x32xf32> to vector<8x32xf32>
    %143 = arith.addf %140, %142 : vector<8x32xf32>
    %144 = vector.shape_cast %143 : vector<8x32xf32> to vector<1x8x32xf32>
    %c0_73 = arith.constant 0 : index
    %c0_74 = arith.constant 0 : index
    %c0_75 = arith.constant 0 : index
    %145 = vector.load %arg11[%c0_73, %c0_74, %c0_75] : memref<1x8x32xf32, #tpu.memory_space<vmem>>, vector<1x8x32xf32>
    tpu.vector_store %arg11[%c0_73, %c0_74, %c0_75], %144 {strides = array<i32>} : memref<1x8x32xf32, #tpu.memory_space<vmem>>, vector<1x8x32xf32>,
    %c0_76 = arith.constant 0 : index
    %c0_77 = arith.constant 0 : index
    %c0_78 = arith.constant 0 : index
    %146 = vector.load %arg14[%c0_76, %c0_77, %c0_78] : memref<1x8x8xf32, #tpu.memory_space<vmem>>, vector<1x8x8xf32>
    %cst_79 = arith.constant 2.500000e-01 : f32
    %147 = vector.broadcast %cst_79 : f32 to vector<1x8x8xf32>
    %148 = arith.mulf %146, %147 : vector<1x8x8xf32>
    %c0_80 = arith.constant 0 : index
    %c0_81 = arith.constant 0 : index
    %c0_82 = arith.constant 0 : index
    %149 = vector.load %arg12[%c0_80, %c0_81, %c0_82] : memref<1x8x8xf32, #tpu.memory_space<vmem>>, vector<1x8x8xf32>
    tpu.vector_store %arg12[%c0_80, %c0_81, %c0_82], %148 {strides = array<i32>} : memref<1x8x8xf32, #tpu.memory_space<vmem>>, vector<1x8x8xf32>,
    return
  }
  func.func @transform_0(%arg0: i32) -> (i32, i32, i32) {
    %c0_i32 = arith.constant 0 : i32
    %c0_i32_0 = arith.constant 0 : i32
    %c0_i32_1 = arith.constant 0 : i32
    return %arg0, %c0_i32, %c0_i32_0 : i32, i32, i32
  }
  func.func @transform_1(%arg0: i32) -> (i32, i32, i32) {
    %c0_i32 = arith.constant 0 : i32
    %c0_i32_0 = arith.constant 0 : i32
    %c0_i32_1 = arith.constant 0 : i32
    return %arg0, %c0_i32, %c0_i32_0 : i32, i32, i32
  }
  func.func @transform_2(%arg0: i32) -> (i32, i32) {
    %c0_i32 = arith.constant 0 : i32
    %c0_i32_0 = arith.constant 0 : i32
    %c0_i32_1 = arith.constant 0 : i32
    return %c0_i32, %c0_i32_0 : i32, i32
  }
  func.func @transform_3(%arg0: i32) -> (i32, i32) {
    %c0_i32 = arith.constant 0 : i32
    %c0_i32_0 = arith.constant 0 : i32
    %c0_i32_1 = arith.constant 0 : i32
    return %c0_i32, %c0_i32_0 : i32, i32
  }
  func.func @transform_4(%arg0: i32) -> (i32, i32) {
    %c0_i32 = arith.constant 0 : i32
    %c0_i32_0 = arith.constant 0 : i32
    %c0_i32_1 = arith.constant 0 : i32
    return %c0_i32, %c0_i32_0 : i32, i32
  }
  func.func @transform_5(%arg0: i32) -> (i32, i32) {
    %c0_i32 = arith.constant 0 : i32
    %c0_i32_0 = arith.constant 0 : i32
    %c0_i32_1 = arith.constant 0 : i32
    return %c0_i32, %c0_i32_0 : i32, i32
  }
  func.func @transform_6(%arg0: i32) -> (i32, i32) {
    %c0_i32 = arith.constant 0 : i32
    %c0_i32_0 = arith.constant 0 : i32
    %c0_i32_1 = arith.constant 0 : i32
    return %c0_i32, %c0_i32_0 : i32, i32
  }
  func.func @transform_7(%arg0: i32) -> (i32, i32) {
    %c0_i32 = arith.constant 0 : i32
    %c0_i32_0 = arith.constant 0 : i32
    %c0_i32_1 = arith.constant 0 : i32
    return %c0_i32, %c0_i32_0 : i32, i32
  }
  func.func @transform_8(%arg0: i32) -> (i32, i32) {
    %c0_i32 = arith.constant 0 : i32
    %c0_i32_0 = arith.constant 0 : i32
    %c0_i32_1 = arith.constant 0 : i32
    return %c0_i32, %c0_i32_0 : i32, i32
  }
  func.func @transform_9(%arg0: i32) -> (i32, i32) {
    %c0_i32 = arith.constant 0 : i32
    %c0_i32_0 = arith.constant 0 : i32
    %c0_i32_1 = arith.constant 0 : i32
    return %c0_i32, %c0_i32_0 : i32, i32
  }
  func.func @transform_10(%arg0: i32) -> (i32, i32, i32) {
    %c0_i32 = arith.constant 0 : i32
    %c0_i32_0 = arith.constant 0 : i32
    %c0_i32_1 = arith.constant 0 : i32
    return %arg0, %c0_i32, %c0_i32_0 : i32, i32, i32
  }
  func.func @transform_11(%arg0: i32) -> (i32, i32, i32) {
    %c0_i32 = arith.constant 0 : i32
    %c0_i32_0 = arith.constant 0 : i32
    %c0_i32_1 = arith.constant 0 : i32
    return %arg0, %c0_i32, %c0_i32_0 : i32, i32, i32
  }
}

</mosaic_0001>

<bundles_post_ra>
// kernel: tpu_custom_call.1
= control target key start
LH: loop header
LB: loop body
LE: loop exit
PB: predicated region body
PF: predicated region fallthrough
CT: control target
= control target key end

     0   :  { %s1932_s0 = inlined_call_operand.hbm [shape: f32[2,8,32], index: 0, kind: input, shape index: {}]   ;;  %s1933_s1 = inlined_call_operand.hbm [shape: f32[2,8,32], index: 1, kind: input, shape index: {}]   ;;  %s1934_s2 = inlined_call_operand.hbm [shape: f32[32,32], index: 2, kind: input, shape index: {}]   ;;  %s1935_s3 = inlined_call_operand.hbm [shape: f32[32,64], index: 3, kind: input, shape index: {}]   ;;  %s1936_s4 = inlined_call_operand.hbm [shape: f32[32,32], index: 4, kind: input, shape index: {}]   ;;  %s1937_s5 = inlined_call_operand.vmem [shape: f32[1,32], index: 5, kind: input, shape index: {}]   ;;  %s1938_s6 = inlined_call_operand.vmem [shape: f32[1,64], index: 6, kind: input, shape index: {}]   ;;  %s1939_s7 = inlined_call_operand.vmem [shape: f32[1,32], index: 7, kind: input, shape index: {}]   ;;  %s1940_s8 = inlined_call_operand.vmem [shape: f32[1,32], index: 8, kind: input, shape index: {}]   ;;  %s1941_s9 = inlined_call_operand.vmem [shape: f32[1,32], index: 9, kind: input, shape index: {}]   ;;  %s1942_s10 = inlined_call_operand.hbm [shape: f32[2,8,32], index: 10, kind: output, shape index: {0}]   ;;  %s1943_s11 = inlined_call_operand.hbm [shape: f32[2,8,8], index: 11, kind: output, shape index: {1}]  }
   0x1   :  { %1950 = sst [smem:[#allocation28_spill]] %s1934_s2 }
   0x2   :  { %1951 = sst [smem:[#allocation29_spill]] %s1935_s3 }
   0x3   :  { %1952 = sst [smem:[#allocation30_spill]] %s1936_s4 }
   0x4   :  { %1953 = sst [smem:[#allocation31_spill]] %s1941_s9 }
   0x5   :  { %17 = vsyncpa [#allocation5], 0 }
   0x6   :  { %19 = vsyncpa [#allocation5 + $0x1], 0 }
   0x7   :  { %20 = vsyncpa [#allocation8], 0 }
   0x8   :  { %22 = vsyncpa [#allocation8 + $0x1], 0 }
   0x9   :  { %23 = vsyncpa [#allocation11], 0 }
   0xa   :  { %24 = vsyncpa [#allocation6], 0 }
   0xb   :  { %26 = vsyncpa [#allocation6 + $0x1], 0 }
   0xc   :  { %27 = vsyncpa [#allocation15], 0 }
   0xd   :  { %29 = vsyncpa [#allocation15 + $0x1], 0  ;;  %s1650_s17 = smov 0   ;;  %s1652_s18 = smov 0  }
   0xe   :  { %s1654_s19 = smov 0   ;;  %s1656_s20 = smov 0  }
   0xf LB: > { %1954 = sst [smem:[#allocation22_spill]] %s1560_s17  ;;  %s1674_s24 = sadd.s32 4294967295, %s1572_s20   ;;  %s1572_s20 = sphi %s1656_s20, %s1975_s20   ;;  %s1568_s19 = sphi %s1654_s19, %s1977_s19   ;;  %s1564_s18 = sphi %s1652_s18, %s1979_s18   ;;  %s1560_s17 = sphi %s1650_s17, %s1978_s17  }
  0x10   : > { %1955 = sst [smem:[#allocation23_spill]] %s1568_s19  ;;  %p1151_p0 = scmp.ge.s32.totalorder %s1572_s20, 1 }
  0x11   : > { %1956 = sst [smem:[#allocation24_spill]] %s1572_s20  ;;  %p56_p1 = scmp.eq.s32.totalorder %s1674_s24, 0 }
  0x12   : > { %s1957_s2 = sld [smem:[#allocation28_spill]]  ;;  %p312_p2 = scmp.lt.s32.totalorder %s1572_s20, 3 }
  0x13   : > { %s1574_s26 = smov [#allocation9]   ;;  %s1959_s3 = sld [smem:[#allocation29_spill]] }
  0x14   : > { %p1679_p3 = pnand %p1151_p0, %p312_p2  ;;  %s325_s27 = sshll.u32 %s1574_s26, 4  ;;  %s326_s27 = int_to_ptr.vmem [resolvable:$true] %s325_s27 }
  0x15   : > { %s1961_s4 = sld [smem:[#allocation30_spill]]  ;;  %s1575_s16 = smov [#allocation10]  }
  0x16   : > { %p1205_p4 = pneg %p1679_p3  ;;  %s339_s21 = sshll.u32 %s1575_s16, 4  ;;  %s340_s21 = int_to_ptr.vmem [resolvable:$true] %s339_s21 }
  0x17   : > { %s1576_s22 = smov 128   ;;  %s1577_s26 = smov 8  }
  0x18   : > { %s323_s23 = sshll.u32 %s1957_s2, 4  ;;  %p1691_p6 = pnand %p1205_p4, %p56_p1  ;;  %s324_s23 = int_to_ptr.hbm [resolvable:$true] %s323_s23 }
  0x19   : > { %s337_s30 = sshll.u32 %s1959_s3, 4  ;;  %s1578_s28 = smov [#allocation12]   ;;  %s338_s30 = int_to_ptr.hbm [resolvable:$true] %s337_s30 }
  0x1a   : > { %1208 = dma.hbm_to_vmem [thread:$0]  (!%p1691_p6), %s324_s23, 512, %s326_s27, [#allocation8], %s1576_s22, %s1576_s22, %s1577_s26  }
  0x1b   : > { %s351_s15 = sshll.u32 %s1961_s4, 4  ;;  %s353_s29 = sshll.u32 %s1578_s28, 4  ;;  %s352_s15 = int_to_ptr.hbm [resolvable:$true] %s351_s15  ;;  %s354_s29 = int_to_ptr.vmem [resolvable:$true] %s353_s29 }
  0x1c   : > { %1211 = dma.hbm_to_vmem [thread:$0]  (!%p1691_p6), %s338_s30, 512, %s340_s21, [#allocation11], %s1576_s22, %s1576_s22, %s1577_s26  }
  0x1d   : > { %1214 = dma.hbm_to_vmem [thread:$0]  (!%p1691_p6), %s352_s15, 512, %s354_s29, [#allocation11], %s1576_s22, %s1576_s22, %s1577_s26  }
  0x1e   : > { %s1150_s13 = sadd.s32 4294967294, %s1572_s20   ;;  %s1706_s14 = sadd.s32 1, %s1572_s20  }
  0x1f   : > { %1962 = sst [smem:[#allocation25_spill]] %s1706_s14  ;;  %s42_s16 = sadd.s32 1, %s1568_s19 }
  0x20   : > { %s39_s23 = ssub.s32 %s1572_s20, %s1706_s14  ;;  %p49_p7 = scmp.ne.s32.totalorder %s1568_s19, %s1564_s18 }
  0x21   : > { %p40_p8 = scmp.eq.s32.totalorder %s39_s23, 0  ;;  %p50_p9 = scmp.eq.s32.totalorder %s1572_s20, 0 }
  0x22   : > { %p55_p10 = scmp.ne.s32.totalorder %s1564_s18, %s1560_s17  ;;  %p273_p11 = scmp.eq.s32.totalorder %s1674_s24, 1 }
  0x23   : > { %s1718_s27 = scalar_select %p40_p8, %s1568_s19, %s42_s16  }
  0x24   : > { %p1720_p12 = por %p50_p9, %p49_p7  ;;  %p1726_p13 = por %p56_p1, %p55_p10 }
  0x25   : > { %1963 = sst [smem:[#allocation26_spill]] %s1718_s27  ;;  %p1730_p0 = por %p273_p11, %p49_p7 }
  0x26   : > { %p279_p2 = scmp.eq.s32.totalorder %s1150_s13, 1  ;;  %p1232_p4 = scmp.lt.s32.totalorder %s1572_s20, 2 }
  0x27   : > { %s382_s21 = sand.u32 1, %s1568_s19   ;;  %s1157_s28 = sshll.u32 %s1572_s20, 3 }
  0x28   : > { %p1736_p6 = por %p279_p2, %p55_p10  ;;  %s1156_s26 = sshll.u32 %s382_s21, 3 }
  0x29   : > { %s390_s23 = scalar_lea.hbm %s1932_s0, %s1157_s28  ;;  %s386_s3 = scalar_lea.vmem [#allocation4], %s1156_s26 }
  0x2a   : > { %s1967_s22 = scalar_select %p1736_p6, 1, 0 }
  0x2b   : > { %s392_s2 = sshll.u32 %s390_s23, 4  ;;  %s394_s4 = sshll.u32 %s386_s3, 4  ;;  %s393_s2 = int_to_ptr.hbm [resolvable:$true] %s392_s2  ;;  %s395_s4 = int_to_ptr.vmem [resolvable:$true] %s394_s4 }
  0x2c   : > { %1968 = sst [smem:[#allocation27_spill]] %s1967_s22  ;;  %p1746_p7 = pnand %p1232_p4, %p1720_p12 }
  0x2d   : > { %s409_s14 = scalar_lea.hbm %s1933_s1, %s1157_s28  ;;  %s401_s22 = sand.u32 1, %s1572_s20  }
  0x2e   : > { %s383_s17 = scalar_lea.sflag [#allocation5], %s382_s21  ;;  %s1402_s29 = sshra.s32 %s393_s2, 4  ;;  %s1403_s29 = int_to_ptr.hbm [resolvable:$true] %s1402_s29 }
  0x2f   : > { %s1404_s16 = scalar_lea.hbm %s1403_s29, 8  ;;  %p1406_p9 = pneg %p1746_p7 }
  0x30   : > { %p1405_p8 = scmp.ne.s32.totalorder %s1403_s29, %s1404_s16  ;;  %s1409_s23 = scalar_lea.hbm %s1932_s0, 16 }
  0x31   : > { %p1410_p12 = scmp.lt.s32.totalorder %s1403_s29, %s1932_s0  ;;  %p1411_p2 = scmp.lt.s32.totalorder %s1409_s23, %s1404_s16 }
  0x32   : > { %p1407_p10 = pnand %p1406_p9, %p1405_p8 }
  0x33   : > { %p1412_p4 = por %p1411_p2, %p1410_p12 }
  0x34   : > { %p1408_p11 = pneg %p1407_p10 }
  0x36   : > { %p1413_p5 = pnand %p1412_p4, %p1408_p11 }
  0x38   : > { %1416 = shalt.err (!%p1413_p5)
}
  0x39   : > { %1218 = dma.hbm_to_vmem [thread:$0]  (!%p1746_p7), %s393_s2, 128, %s395_s4, %s383_s17  }
  0x3a   : > { %s411_s21 = sshll.u32 %s409_s14, 4  ;;  %s405_s28 = scalar_lea.vmem [#allocation7], %s1156_s26  ;;  %s412_s21 = int_to_ptr.hbm [resolvable:$true] %s411_s21 }
  0x3b   : > { %s413_s20 = sshll.u32 %s405_s28, 4  ;;  %s402_s9 = scalar_lea.sflag [#allocation8], %s401_s22  ;;  %s414_s20 = int_to_ptr.vmem [resolvable:$true] %s413_s20 }
  0x3c   : > { %s1432_s3 = sshra.s32 %s412_s21, 4  ;;  %s1439_s23 = scalar_lea.hbm %s1933_s1, 16  ;;  %s1433_s3 = int_to_ptr.hbm [resolvable:$true] %s1432_s3 }
  0x3d   : > { %s1434_s30 = scalar_lea.hbm %s1433_s3, 8  ;;  %p1440_p5 = scmp.lt.s32.totalorder %s1433_s3, %s1933_s1 }
  0x3e   : > { %p1435_p8 = scmp.ne.s32.totalorder %s1433_s3, %s1434_s30  ;;  %p1441_p11 = scmp.lt.s32.totalorder %s1439_s23, %s1434_s30 }
  0x40   : > { %p1437_p10 = pnand %p1435_p8, %p1406_p9  ;;  %p1442_p2 = por %p1441_p11, %p1440_p5 }
  0x42   : > { %p1438_p12 = pneg %p1437_p10 }
  0x44   : > { %p1443_p4 = pnand %p1442_p2, %p1438_p12 }
  0x46   : > { %1446 = shalt.err (!%p1443_p4)
}
  0x47   : > { %1221 = dma.hbm_to_vmem [thread:$0]  (!%p1746_p7), %s412_s21, 128, %s414_s20, %s402_s9  }
  0x48   : > { %422 = sbr.rel (%p1679_p3) target bundleno = 1720 (0x6b8), region = 60  ;;  %s1781_s4 = sand.u32 (!%p1679_p3), 1, %s1564_s18  }
  0x49   : > { %s1784_s17 = sshll.u32 (!%p1679_p3), %s1781_s4, 3  ;;  %s425_s14 = scalar_lea.sflag (!%p1679_p3), [#allocation5], %s1781_s4 }
  0x4a   : > { %s428_s22 = scalar_lea.vmem (!%p1679_p3), [#allocation4], %s1784_s17 }
  0x4d   : > { %1535 = dma.done.wait (%p1726_p13), %s425_s14, 128  }
  0x4e   : > { %1537 = vsyncadd (%p1726_p13), %s425_s14, 4294967168  ;;  %s434_s9 = sand.u32 1, %s1674_s24   ;;  %s438_s25 = scalar_lea.vmem [#allocation7], %s1784_s17 }
  0x4f   : > { %s435_s20 = scalar_lea.sflag [#allocation8], %s434_s9 }
  0x50   : > { %1539 = dma.done.wait (%p1726_p13), %s435_s20, 128  }
  0x51   : > { %1541 = vsyncadd (%p1726_p13), %s435_s20, 4294967168 }
  0x52   : > { %1543 = dma.done.wait (%p56_p1), [#allocation8], 512  }
  0x53   : > { %1545 = vsyncadd (%p56_p1), [#allocation8], 4294966784 }
  0x54   : > { %1547 = dma.done.wait (%p56_p1), [#allocation11], 1024  }
  0x55   : > { %1549 = vsyncadd (%p56_p1), [#allocation11], 4294966272  ;;  %v510_v0 = vld [vmem:[#allocation9 + $0x10] sm:$0xff]  ;;  %v511_v1 = vld [vmem:[#allocation9 + $0x18] sm:$0xff]  ;;  %vm530_vm0 = vcmask 261120   ;;  %vm570_vm1 = vcmask 64512  }
  0x56   : > { %v516_v2 = vld [vmem:[#allocation10 + $0x10] sm:$0xff]  ;;  %v513_v3 = vpack.c.bf16 %v511_v1, %v510_v0  ;;  %v517_v4 = vld [vmem:[#allocation10 + $0x18] sm:$0xff]  ;;  %v508_v5 = vld [vmem:[#allocation9] sm:$0xff]  ;;  %s1579_s21 = smov 96   ;;  %s1580_s28 = smov 120   ;;  %vm624_vm2 = vcmask 1043456  }
  0x57   : > { %v509_v6 = vld [vmem:[#allocation9 + $0x8] sm:$0xff]  ;;  %v519_v7 = vpack.c.bf16 %v517_v4, %v516_v2  ;;  %v514_v8 = vld [vmem:[#allocation10] sm:$0xff]  ;;  %v506_v12 = vld [vmem:[%s438_s25] sm:$0xff]  ;;  %s1581_s3 = smov 112   ;;  %s1582_s30 = smov 104  }
  0x58   : > { %v515_v9 = vld [vmem:[#allocation10 + $0x8] sm:$0xff]  ;;  %540 = vmatpush.bf16.msra.mxu0 %v513_v3  ;;  %v512_v10 = vpack.c.bf16 %v509_v6, %v508_v5  ;;  %v507_v15 = vpack.c.bf16 %v506_v12, %v506_v12  ;;  %v1285_v16 = vld [vmem:[%s1937_s5] ss:$0 sm:$0xff]  ;;  %s1583_s29 = smov 88   ;;  %s1584_s16 = smov 80  }
  0x59   : > { %v1806_v11 = vld [vmem:[%s428_s22] sm:$0xff]  ;;  %561 = vmatpush.bf16.msra.mxu1 %v519_v7  ;;  %v518_v13 = vpack.c.bf16 %v515_v9, %v514_v8  ;;  %v1286_v17 = vld [vmem:[%s1938_s6] ss:$0 sm:$0xff]  ;;  %s1585_s23 = smov 72   ;;  %s1586_s19 = smov 16  }
  0x5a   : > { %v505_v14 = vpack.c.bf16 %v1806_v11, %v1806_v11  ;;  %s502_s2 = scalar_lea.vmem [#allocation14], %s1784_s17  ;;  %s1587_s14 = smov 8  }
  0x5b   : > { %s1588_s22 = smov 24   ;;  %s1181_s25 = sshll.u32 %s1674_s24, 3 }
  0x5c   : > { %541 = vmatpush.bf16.msra.mxu0 %v512_v10  ;;  %s991_s13 = scalar_lea.hbm %s1943_s11, %s1181_s25  ;;  %s993_s27 = sshll.u32 %s502_s2, 4  ;;  %s994_s27 = int_to_ptr.vmem [resolvable:$true] %s993_s27 }
  0x5d   : > { %562 = vmatpush.bf16.msra.mxu1 %v518_v13 }
  0x5f   : > { %1168 = vmatmul.msk.bf16.vlgmr.msra.gmra.mxu0 %vm530_vm0, %v505_v14 }
  0x60   : > { %1169 = vmatmul.msk.bf16.vlgmr.msra.gmra.mxu1 %vm530_vm0, %v507_v15 }
  0xdc   : > { %v543_v18 = vpop.f32.mrf.mxu0 }
  0xdd   : > { %v544_v19 = vadd.f32 %v1285_v16, %v543_v18  ;;  %v564_v20 = vpop.f32.mrf.mxu1 }
  0xde   : > { %v565_v21 = vadd.f32 %v1286_v17, %v564_v20 }
  0xdf   : > { %v547_v22 = vmul.f32 0.35355338, %v544_v19 }
  0xe0   : > { %v569_v23 = vpack.c.bf16 %v565_v21, %v565_v21 }
  0xe1   : > { %v568_v24 = vpack.c.bf16 %v547_v22, %v547_v22 }
  0xe2   : > { %v617_v25 = vunpack.c.l.b16 %v569_v23  ;;  %v575_v26 = vsel %vm570_vm1, %v569_v23, 0 }
  0xe3   : > { %v643_v27 = vunpack.c.l.b16 %v568_v24  ;;  %584 = vmatpush.bf16.xpose.msra.mxu2 %v575_v26 }
  0xe4   : > { %v1819_v28 = vpack.c.b16 %v617_v25, %v617_v25  ;;  %v545_v29 = vpop.f32.mrf.mxu0 }
  0xe5   : > { %v566_v30 = vpop.f32.mrf.mxu1  ;;  %v644_v31 = vpack.c.b16 %v643_v27, %v643_v27 }
  0xe6   : > { %619 = vrot.lane.b32.xlu1 %v1819_v28, %s1579_s21  ;;  %s995_s21 = sshll.u32 %s991_s13, 4  ;;  %s996_s21 = int_to_ptr.hbm [resolvable:$true] %s995_s21 }
  0xe7   : > { %645 = vrot.lane.b32.xlu2 %v644_v31, %s1580_s28 }
  0xea   : > { %1170 = vmatmul.msk.bf16.vlgmr.msra.gmra.mxu2 %vm570_vm1, %v568_v24 }
  0xee   : > { %647 = vrot.lane.b32.xlu1 %v1819_v28, %s1580_s28  ;;  %s967_s28 = scalar_lea.sflag [#allocation15], %s1781_s4 }
  0xef   : > { %725 = vrot.lane.b32.xlu2 %v1819_v28, %s1581_s3 }
  0xf6   : > { %723 = vrot.lane.b32.xlu1 %v644_v31, %s1581_s3  ;;  %s1476_s3 = sshra.s32 %s996_s21, 4  ;;  %s1477_s3 = int_to_ptr.hbm [resolvable:$true] %s1476_s3 }
  0xf7   : > { %801 = vrot.lane.b32.xlu2 %v644_v31, %s1582_s30  ;;  %p1483_p7 = scmp.lt.s32.totalorder %s1477_s3, %s1943_s11 }
 0x141   : > { %v646_v32 = vpop.permute.xlu2 %645 }
 0x149   : > { %v726_v33 = vpop.permute.xlu2 %725 }
 0x14a   : > { %v731_v34 = vsel %vm570_vm1, %v726_v33, 0 }
 0x14b   : > { %740 = vmatpush.bf16.xpose.msrb.mxu1 %v731_v34 }
 0x151   : > { %v802_v2 = vpop.permute.xlu2 %801 }
 0x158   : > { %v620_v35 = vpop.permute.xlu1 %619 }
 0x159   : > { %v626_v36 = vsel %vm624_vm2, %v620_v35, 0 }
 0x15a   : > { %635 = vmatpush.bf16.msra.mxu3 %v626_v36 }
 0x160   : > { %v648_v37 = vpop.permute.xlu1 %647 }
 0x161   : > { %v653_v38 = vsel %vm570_vm1, %v648_v37, 0 }
 0x162   : > { %662 = vmatpush.bf16.xpose.msrb.mxu3 %v653_v38 }
 0x168   : > { %v724_v39 = vpop.permute.xlu1 %723 }
 0x169   : > { %1174 = vmatmul.msk.bf16.vlgmr.msrb.gmra.mxu1 %vm570_vm1, %v724_v39 }
 0x16d   : > { %v586_v40 = vpop.f32.mrf.mxu2 }
 0x16e   : > { %v590_v41 = vsel %vm570_vm1, %v586_v40, -inf }
 0x16f   : > { %591 = vmax.xlane.f32.xlu0 %v590_v41 }
 0x175   : > { %v588_v42 = vpop.f32.mrf.mxu2 }
 0x1e2   : > { %v592_v43 = vpop.xlane.xlu0 %591 }
 0x1e3   : > { %v593_v44 = vsub.f32 %v586_v40, %v592_v43 }
 0x1e5   : > { %v594_v45 = vmul.f32 1.442695, %v593_v44 }
 0x1e6   : > { %v742_v46 = vpop.f32.mrf.mxu1 }
 0x1e7   : > { %1290 = vpow2.f32 %v594_v45  ;;  %v746_v47 = vsel %vm570_vm1, %v742_v46, -inf }
 0x1e8   : > { %747 = vmax.xlane.f32.xlu2 %v746_v47 }
 0x1ed   : > { %v1291_v48 = vpop.eup %1290 }
 0x1ee   : > { %v744_v49 = vpop.f32.mrf.mxu1  ;;  %v596_v50 = vsel %vm570_vm1, %v1291_v48, 0.0 }
 0x1ef   : > { %597 = vadd.xlane.f32.xlu0 %v596_v50 }
 0x203   : > { %803 = vrot.lane.b32.xlu0 %v1819_v28, %s1582_s30  ;;  %s1478_s30 = scalar_lea.hbm %s1477_s3, 8 }
 0x204   : > { %p1479_p1 = scmp.ne.s32.totalorder %s1477_s3, %s1478_s30 }
 0x206   : > { %p1480_p3 = pnand %p1479_p1, %p1730_p0 }
 0x208   : > { %p1481_p13 = pneg %p1480_p3 }
 0x25b   : > { %v748_v4 = vpop.xlane.xlu2 %747 }
 0x25c   : > { %v749_v5 = vsub.f32 %v742_v46, %v748_v4 }
 0x25e   : > { %v750_v7 = vmul.f32 1.442695, %v749_v5 }
 0x262   : > { %v598_v51 = vpop.xlane.xlu0 %597 }
 0x263   : > { %1292 = vrcp.f32 %v598_v51  ;;  %v610_v55 = vand.u32 2147483648, %v598_v51  ;;  %v608_v57 = vand.u32 2147483647, %v598_v51  ;;  %vm604_vm4 = vweird.f32 %v598_v51 }
 0x264   : > { %1294 = vpow2.f32 %v750_v7 }
 0x265   : > { %v611_v59 = vor.u32 1.1754944e-38, %v610_v55  ;;  %vm609_vm6 = vcmp.eq.f32.partialorder %v608_v57, 8.507059e+37 }
 0x269   : > { %v1293_v52 = vpop.eup %1292 }
 0x26a   : > { %v600_v53 = vmul.f32 %v1293_v52, %v598_v51  ;;  %vm605_vm3 = vweird.f32 %v1293_v52  ;;  %v1295_v10 = vpop.eup %1294 }
 0x26b   : > { %vm606_vm5 = vmor %vm604_vm4, %vm605_vm3  ;;  %v752_v13 = vsel %vm570_vm1, %v1295_v10, 0.0 }
 0x26c   : > { %v601_v54 = vsub.f32 1.0, %v600_v53 }
 0x26e   : > { %v602_v56 = vmul.f32 %v1293_v52, %v601_v54 }
 0x270   : > { %v603_v58 = vadd.f32 %v1293_v52, %v602_v56 }
 0x272   : > { %v607_v60 = vsel %vm606_vm5, %v1293_v52, %v603_v58 }
 0x273   : > { %v612_v61 = vsel %vm609_vm6, %v611_v59, %v607_v60  ;;  %vm799_vm6 = vcmask 195712  }
 0x274   : > { %v613_v62 = vmul.f32 %v1291_v48, %v612_v61 }
 0x275   : > { %v804_v63 = vpop.permute.xlu0 %803 }
 0x276   : > { %v809_v0 = vsel %vm570_vm1, %v804_v63, 0  ;;  %614 = vst.msk [vmem:[#allocation3] sm:$0xff] %vm570_vm1, %v613_v62  ;;  %v615_v1 = vpack.c.bf16 %v613_v62, %v613_v62 }
 0x278   : > { %1171 = vmatmul.msk.bf16.vlgmr.msra.gmra.mxu3 %vm570_vm1, %v615_v1 }
 0x279   : > { %818 = vmatpush.bf16.xpose.msra.mxu3 %v809_v0 }
 0x288   : > { %1172 = vmatmul.msk.bf16.vlgmr.msrb.gmra.mxu3 %vm570_vm1, %v646_v32 }
 0x298   : > { %1176 = vmatmul.msk.bf16.vlgmr.msra.gmra.mxu3 %vm570_vm1, %v802_v2 }
 0x2fb   : > { %v637_v3 = vpop.f32.mrf.mxu3 }
 0x2fc   : > { %641 = vst.msk [vmem:[#allocation2] sm:$0xff] %vm570_vm1, %v637_v3 }
 0x303   : > { %v639_v6 = vpop.f32.mrf.mxu3 }
 0x30b   : > { %v664_v8 = vpop.f32.mrf.mxu3 }
 0x30c   : > { %v668_v9 = vsel %vm570_vm1, %v664_v8, -inf }
 0x30d   : > { %669 = vmax.xlane.f32.xlu1 %v668_v9 }
 0x313   : > { %v666_v12 = vpop.f32.mrf.mxu3 }
 0x315   : > { %753 = vadd.xlane.f32.xlu1 %v752_v13 }
 0x31b   : > { %v820_v14 = vpop.f32.mrf.mxu3 }
 0x31c   : > { %v824_v15 = vsel %vm570_vm1, %v820_v14, -inf }
 0x31d   : > { %825 = vmax.xlane.f32.xlu0 %v824_v15 }
 0x323   : > { %v822_v16 = vpop.f32.mrf.mxu3 }
 0x32e   : > { %696 = vrot.lane.b32.xlu1 %v1819_v28, %s1583_s29 }
 0x331   : > { %774 = vrot.lane.b32.xlu0 %v1819_v28, %s1584_s16 }
 0x380   : > { %v670_v17 = vpop.xlane.xlu1 %669 }
 0x381   : > { %v671_v18 = vsub.f32 %v664_v8, %v670_v17 }
 0x383   : > { %v672_v19 = vmul.f32 1.442695, %v671_v18 }
 0x385   : > { %1296 = vpow2.f32 %v672_v19 }
 0x388   : > { %v754_v20 = vpop.xlane.xlu1 %753 }
 0x389   : > { %1298 = vrcp.f32 %v754_v20  ;;  %v766_v32 = vand.u32 2147483648, %v754_v20  ;;  %vm760_vm8 = vweird.f32 %v754_v20  ;;  %v764_v33 = vand.u32 2147483647, %v754_v20 }
 0x38b   : > { %v1297_v21 = vpop.eup %1296  ;;  %v767_v37 = vor.u32 1.1754944e-38, %v766_v32  ;;  %vm765_vm10 = vcmp.eq.f32.partialorder %v764_v33, 8.507059e+37 }
 0x38c   : > { %v674_v22 = vsel %vm570_vm1, %v1297_v21, 0.0 }
 0x38d   : > { %675 = vadd.xlane.f32.xlu2 %v674_v22 }
 0x38f   : > { %v1299_v23 = vpop.eup %1298 }
 0x390   : > { %v756_v24 = vmul.f32 %v1299_v23, %v754_v20  ;;  %v826_v25 = vpop.xlane.xlu0 %825  ;;  %vm761_vm7 = vweird.f32 %v1299_v23 }
 0x391   : > { %v827_v26 = vsub.f32 %v820_v14, %v826_v25  ;;  %vm762_vm9 = vmor %vm760_vm8, %vm761_vm7  ;;  %vm877_vm7 = vcmask 261312  }
 0x392   : > { %v757_v27 = vsub.f32 1.0, %v756_v24  ;;  %v523_v24 = vld [vmem:[#allocation12 + $0x18] sm:$0xff] }
 0x393   : > { %v828_v29 = vmul.f32 1.442695, %v827_v26  ;;  %v520_v26 = vld [vmem:[#allocation12] sm:$0xff] }
 0x394   : > { %v758_v30 = vmul.f32 %v1299_v23, %v757_v27  ;;  %v521_v27 = vld [vmem:[#allocation12 + $0x8] sm:$0xff] }
 0x395   : > { %1300 = vpow2.f32 %v828_v29  ;;  %v524_v29 = vpack.c.bf16 %v521_v27, %v520_v26 }
 0x396   : > { %v759_v31 = vadd.f32 %v1299_v23, %v758_v30 }
 0x398   : > { %v763_v35 = vsel %vm762_vm9, %v1299_v23, %v759_v31  ;;  %v522_v23 = vld [vmem:[#allocation12 + $0x10] sm:$0xff] }
 0x399   : > { %v768_v38 = vsel %vm765_vm10, %v767_v37, %v763_v35  ;;  %v525_v25 = vpack.c.bf16 %v523_v24, %v522_v23  ;;  %v1287_v35 = vld [vmem:[%s1939_s7] ss:$0 sm:$0xff] }
 0x39a   : > { %v769_v41 = vmul.f32 %v1295_v10, %v768_v38 }
 0x39b   : > { %v1845_v34 = vpop.eup %1300  ;;  %894 = vmatpush.bf16.msra.mxu1 %v525_v25 }
 0x39c   : > { %v830_v36 = vsel %vm570_vm1, %v1845_v34, 0.0  ;;  %v773_v44 = vpack.c.bf16 %v769_v41, %v769_v41 }
 0x39d   : > { %831 = vadd.xlane.f32.xlu2 %v830_v36 }
 0x39f   : > { %895 = vmatpush.bf16.msra.mxu1 %v524_v29 }
 0x3a0   : > { %v697_v39 = vpop.permute.xlu1 %696 }
 0x3a1   : > { %v702_v40 = vsel %vm624_vm2, %v697_v39, 0 }
 0x3a2   : > { %711 = vmatpush.bf16.msrb.mxu0 %v702_v40 }
 0x3a3   : > { %v775_v42 = vpop.permute.xlu0 %774 }
 0x3a4   : > { %v780_v43 = vsel %vm624_vm2, %v775_v42, 0 }
 0x3a5   : > { %789 = vmatpush.bf16.msrb.mxu2 %v780_v43 }
 0x3a8   : > { %1175 = vmatmul.msk.bf16.vlgmr.msrb.gmra.mxu2 %vm570_vm1, %v773_v44 }
 0x3b5   : > { %852 = vrot.lane.b32.xlu2 %v1819_v28, %s1585_s23  ;;  %v692_v28 = vld [vmem:[#allocation3] sm:$0xff]  ;;  %s1482_s23 = scalar_lea.hbm %s1943_s11, 16 }
 0x3b6   : > { %p1484_p9 = scmp.lt.s32.totalorder %s1482_s23, %s1478_s30 }
 0x3b8   : > { %p1485_p8 = por %p1484_p9, %p1483_p7 }
 0x3ba   : > { %p1486_p10 = pnand %p1485_p8, %p1481_p13 }
 0x400   : > { %v676_v45 = vpop.xlane.xlu2 %675 }
 0x401   : > { %1302 = vrcp.f32 %v676_v45  ;;  %v688_v50 = vand.u32 2147483648, %v676_v45  ;;  %v686_v51 = vand.u32 2147483647, %v676_v45  ;;  %vm682_vm12 = vweird.f32 %v676_v45 }
 0x403   : > { %v689_v54 = vor.u32 1.1754944e-38, %v688_v50  ;;  %vm687_vm14 = vcmp.eq.f32.partialorder %v686_v51, 8.507059e+37 }
 0x407   : > { %v1303_v46 = vpop.eup %1302 }
 0x408   : > { %v678_v47 = vmul.f32 %v1303_v46, %v676_v45  ;;  %vm683_vm11 = vweird.f32 %v1303_v46 }
 0x409   : > { %vm684_vm13 = vmor %vm682_vm12, %vm683_vm11 }
 0x40a   : > { %v679_v48 = vsub.f32 1.0, %v678_v47 }
 0x40c   : > { %v680_v49 = vmul.f32 %v1303_v46, %v679_v48 }
 0x40e   : > { %v681_v52 = vadd.f32 %v1303_v46, %v680_v49 }
 0x410   : > { %v685_v53 = vsel %vm684_vm13, %v1303_v46, %v681_v52  ;;  %v832_v55 = vpop.xlane.xlu2 %831 }
 0x411   : > { %1304 = vrcp.f32 %v832_v55  ;;  %v690_v56 = vsel %vm687_vm14, %v689_v54, %v685_v53  ;;  %v844_v1 = vand.u32 2147483648, %v832_v55  ;;  %v842_v3 = vand.u32 2147483647, %v832_v55 }
 0x412   : > { %v691_v57 = vmul.f32 %v1297_v21, %v690_v56  ;;  %vm838_vm3 = vweird.f32 %v832_v55 }
 0x413   : > { %v845_v6 = vor.u32 1.1754944e-38, %v844_v1  ;;  %vm843_vm5 = vcmp.eq.f32.partialorder %v842_v3, 8.507059e+37 }
 0x414   : > { %v693_v58 = vadd.f32 %v692_v28, %v691_v57  ;;  %v695_v59 = vpack.c.bf16 %v691_v57, %v691_v57 }
 0x416   : > { %694 = vst.msk [vmem:[#allocation3] sm:$0xff] %vm570_vm1, %v693_v58  ;;  %1173 = vmatmul.msk.bf16.vlgmr.msrb.gmra.mxu0 %vm570_vm1, %v695_v59 }
 0x417   : > { %v1305_v60 = vpop.eup %1304 }
 0x418   : > { %v834_v61 = vmul.f32 %v1305_v60, %v832_v55  ;;  %v853_v62 = vpop.permute.xlu2 %852  ;;  %vm839_vm15 = vweird.f32 %v1305_v60 }
 0x419   : > { %v858_v63 = vsel %vm624_vm2, %v853_v62, 0  ;;  %vm840_vm4 = vmor %vm838_vm3, %vm839_vm15  ;;  %vm721_vm2 = vcmask 130112  }
 0x41a   : > { %v835_v0 = vsub.f32 1.0, %v834_v61  ;;  %867 = vmatpush.bf16.msra.mxu0 %v858_v63 }
 0x41c   : > { %v836_v2 = vmul.f32 %v1305_v60, %v835_v0 }
 0x41d   : > { %v770_v5 = vld [vmem:[#allocation3] sm:$0xff] }
 0x41e   : > { %v837_v4 = vadd.f32 %v1305_v60, %v836_v2  ;;  %v771_v7 = vadd.f32 %v770_v5, %v769_v41  ;;  %v1589_v41 = vmov 32.0  }
 0x41f   : > { %1306 = vrcp.f32 %v1589_v41 }
 0x420   : > { %v841_v8 = vsel %vm840_vm4, %v1305_v60, %v837_v4  ;;  %772 = vst.msk [vmem:[#allocation3] sm:$0xff] %vm570_vm1, %v771_v7 }
 0x421   : > { %v846_v9 = vsel %vm843_vm5, %v845_v6, %v841_v8 }
 0x422   : > { %v847_v10 = vmul.f32 %v1845_v34, %v846_v9 }
 0x424   : > { %v851_v12 = vpack.c.bf16 %v847_v10, %v847_v10 }
 0x425   : > { %v1307_v42 = vpop.eup %1306 }
 0x426   : > { %1177 = vmatmul.msk.bf16.vlgmr.msra.gmra.mxu0 %vm570_vm1, %v851_v12  ;;  %v906_v43 = vmul.f32 32.0, %v1307_v42 }
 0x427   : > { %v848_v13 = vld [vmem:[#allocation3] sm:$0xff] }
 0x428   : > { %v849_v14 = vadd.f32 %v848_v13, %v847_v10  ;;  %v907_v44 = vsub.f32 1.0, %v906_v43 }
 0x42a   : > { %850 = vst.msk [vmem:[#allocation3] sm:$0xff] %vm570_vm1, %v849_v14  ;;  %v908_v45 = vmul.f32 %v1307_v42, %v907_v44 }
 0x42b   : > { %v791_v15 = vpop.f32.mrf.mxu2 }
 0x42c   : > { %796 = vrot.lane.b32.xlu1 %v791_v15, %s1586_s19  ;;  %v909_v46 = vadd.f32 %v1307_v42, %v908_v45 }
 0x431   : > { %v958_v16 = vld [vmem:[#allocation3] sm:$0xff] }
 0x432   : > { %v959_v18 = vmul.f32 0.25, %v958_v16 }
 0x433   : > { %v793_v17 = vpop.f32.mrf.mxu2 }
 0x434   : > { %960 = vst.msk [vmem:[%s502_s2] sm:$0xff] %vm570_vm1, %v959_v18  ;;  %vm910_vm1 = vweird.f32 %v1307_v42 }
 0x435   : > { %v911_v47 = vsel %vm910_vm1, %v1307_v42, %v909_v46 }
 0x493   : > { %v713_v19 = vpop.f32.mrf.mxu0 }
 0x494   : > { %718 = vrot.lane.b32.xlu0 %v713_v19, %s1587_s14 }
 0x49b   : > { %v715_v20 = vpop.f32.mrf.mxu0 }
 0x49e   : > { %v797_v31 = vpop.permute.xlu1 %796 }
 0x4a3   : > { %v869_v21 = vpop.f32.mrf.mxu0 }
 0x4a4   : > { %874 = vrot.lane.b32.xlu2 %v869_v21, %s1588_s22 }
 0x4ab   : > { %v871_v22 = vpop.f32.mrf.mxu0 }
 0x4fe   : > { %v875_v32 = vpop.permute.xlu2 %874 }
 0x506   : > { %v719_v30 = vpop.permute.xlu0 %718 }
 0x507   : > { %722 = vst.msk [vmem:[#allocation2] sm:$0xff] %vm721_vm2, %v719_v30 }
 0x508   : > { %800 = vst.msk [vmem:[#allocation2] sm:$0xff] %vm799_vm6, %v797_v31 }
 0x509   : > { %878 = vst.msk [vmem:[#allocation2] sm:$0xff] %vm877_vm7, %v875_v32 }
 0x510   : > { %v879_v33 = vld [vmem:[#allocation2] sm:$0xff] }
 0x511   : > { %v880_v34 = vpack.c.bf16 %v879_v33, %v879_v33 }
 0x513   : > { %1178 = vmatmul.msk.bf16.vlgmr.msra.gmra.mxu1 %vm530_vm0, %v880_v34 }
 0x590   : > { %v897_v36 = vpop.f32.mrf.mxu1 }
 0x591   : > { %v898_v37 = vadd.f32 %v1287_v35, %v897_v36 }
 0x593   : > { %v901_v38 = vadd.f32 %v898_v37, %v1806_v11 }
 0x595   : > { %v902_v39 = vsel %vm530_vm0, %v901_v38, 0.0 }
 0x596   : > { %903 = vadd.xlane.f32.xlu0 %v902_v39 }
 0x598   : > { %v899_v40 = vpop.f32.mrf.mxu1 }
 0x609   : > { %v904_v48 = vpop.xlane.xlu0 %903 }
 0x60a   : > { %v912_v49 = vmul.f32 %v911_v47, %v904_v48 }
 0x60c   : > { %v913_v11 = vsub.f32 %v901_v38, %v912_v49 }
 0x60e   : > { %v914_v50 = vmul.f32 %v913_v11, %v913_v11 }
 0x610   : > { %v915_v51 = vsel %vm530_vm0, %v914_v50, 0.0 }
 0x611   : > { %916 = vadd.xlane.f32.xlu1 %v915_v51 }
 0x612   : > { %1489 = shalt.err (!%p1486_p10)
}
 0x613   : > { %1202 = dma.vmem_to_hbm [thread:$0]  (%p1730_p0), %s994_s27, 128, %s996_s21, %s967_s28   ;;  %v1288_v9 = vld [vmem:[%s1940_s8] ss:$0 sm:$0xff] }
 0x614   : > { %s977_s12 = scalar_lea.hbm %s1942_s10, %s1181_s25  ;;  %s1970_s27 = sld [smem:[#allocation31_spill]] }
 0x615   : > { %s495_s21 = scalar_lea.vmem [#allocation13], %s1784_s17  ;;  %s981_s3 = sshll.u32 %s977_s12, 4  ;;  %s982_s3 = int_to_ptr.hbm [resolvable:$true] %s981_s3 }
 0x616   : > { %s979_s28 = sshll.u32 %s495_s21, 4  ;;  %s962_s24 = scalar_lea.sflag [#allocation6], %s1781_s4  ;;  %s980_s28 = int_to_ptr.vmem [resolvable:$true] %s979_s28 }
 0x617   : > { %s1504_s30 = sshra.s32 %s982_s3, 4  ;;  %s1510_s17 = scalar_lea.hbm %s1942_s10, 16  ;;  %s1505_s30 = int_to_ptr.hbm [resolvable:$true] %s1504_s30 }
 0x618   : > { %s1506_s25 = scalar_lea.hbm %s1505_s30, 8  ;;  %p1511_p2 = scmp.lt.s32.totalorder %s1505_s30, %s1942_s10 }
 0x619   : > { %p1507_p12 = scmp.ne.s32.totalorder %s1505_s30, %s1506_s25  ;;  %p1512_p4 = scmp.lt.s32.totalorder %s1510_s17, %s1506_s25 }
 0x61a   : > { %v1289_v13 = vld [vmem:[%s1970_s27] ss:$0 sm:$0xff] }
 0x61b   : > { %p1508_p5 = pnand %p1507_p12, %p1730_p0  ;;  %p1513_p1 = por %p1512_p4, %p1511_p2 }
 0x61d   : > { %p1509_p11 = pneg %p1508_p5 }
 0x61f   : > { %p1514_p3 = pnand %p1513_p1, %p1509_p11 }
 0x684   : > { %v917_v52 = vpop.xlane.xlu1 %916 }
 0x685   : > { %v918_v53 = vmul.f32 0.032258064, %v917_v52 }
 0x687   : > { %1308 = vrsqrt.f32 %v918_v53  ;;  %vm926_vm8 = vcmp.eq.f32.partialorder %v918_v53, inf  ;;  %v929_v60 = vand.u32 2147483648, %v918_v53  ;;  %vm928_vm9 = vcmp.eq.f32.partialorder %v918_v53, 0.0 }
 0x68d   : > { %v1309_v54 = vpop.eup %1308 }
 0x68e   : > { %v920_v55 = vmul.f32 %v1309_v54, %v918_v53 }
 0x690   : > { %v921_v56 = vmul.f32 %v1309_v54, %v920_v55 }
 0x692   : > { %v922_v57 = vmul.f32 0.5, %v921_v56 }
 0x694   : > { %v923_v28 = vsub.f32 1.5, %v922_v57 }
 0x696   : > { %v924_v58 = vmul.f32 %v1309_v54, %v923_v28 }
 0x698   : > { %v925_v59 = vmul.f32 %v924_v58, %v918_v53 }
 0x69a   : > { %v927_v61 = vsel %vm926_vm8, %v918_v53, %v925_v59 }
 0x69b   : > { %v930_v62 = vsel %vm928_vm9, %v929_v60, %v927_v61 }
 0x69c   : > { %v931_v63 = vadd.f32 1e-05, %v930_v62 }
 0x69e   : > { %1310 = vrcp.f32 %v931_v63  ;;  %v943_v3 = vand.u32 2147483648, %v931_v63  ;;  %v941_v5 = vand.u32 2147483647, %v931_v63  ;;  %vm937_vm11 = vweird.f32 %v931_v63 }
 0x6a0   : > { %v944_v7 = vor.u32 1.1754944e-38, %v943_v3  ;;  %vm942_vm13 = vcmp.eq.f32.partialorder %v941_v5, 8.507059e+37 }
 0x6a4   : > { %v1311_v0 = vpop.eup %1310 }
 0x6a5   : > { %v933_v1 = vmul.f32 %v1311_v0, %v931_v63  ;;  %vm938_vm10 = vweird.f32 %v1311_v0 }
 0x6a6   : > { %vm939_vm12 = vmor %vm937_vm11, %vm938_vm10 }
 0x6a7   : > { %v934_v2 = vsub.f32 1.0, %v933_v1 }
 0x6a9   : > { %v935_v4 = vmul.f32 %v1311_v0, %v934_v2 }
 0x6ab   : > { %v936_v6 = vadd.f32 %v1311_v0, %v935_v4 }
 0x6ad   : > { %v940_v8 = vsel %vm939_vm12, %v1311_v0, %v936_v6 }
 0x6ae   : > { %v945_v10 = vsel %vm942_vm13, %v944_v7, %v940_v8 }
 0x6af   : > { %v947_v12 = vmul.f32 %v945_v10, %v913_v11 }
 0x6b1   : > { %v951_v14 = vmul.f32 %v1288_v9, %v947_v12 }
 0x6b3   : > { %v956_v15 = vadd.f32 %v1289_v13, %v951_v14 }
 0x6b5   : > { %957 = vst.msk [vmem:[%s495_s21] sm:$0xff] %vm530_vm0, %v956_v15 }
 0x6b6   : > { %1517 = shalt.err (!%p1514_p3)
}
 0x6b7   : > { %1201 = dma.vmem_to_hbm [thread:$0]  (%p1730_p0), %s980_s28, 128, %s982_s3, %s962_s24  }
 0x6b8 PF: > { %s1971_s4 = sld [smem:[#allocation22_spill]] }
 0x6b9   : > { %s1973_s2 = sld [smem:[#allocation24_spill]] }
 0x6be   : > { %s1007_s22 = sand.u32 1, %s1971_s4  }
 0x6bf   : > { %p1974_p13 = scmp.ge.s32.totalorder %s1973_s2, 2  ;;  %s1008_s9 = scalar_lea.sflag [#allocation6], %s1007_s22 }
 0x6c1   : > { %p1223_p7 = pnand %p1974_p13, %p1736_p6 }
 0x6c3   : > { %p1224_p9 = pneg %p1223_p7 }
 0x6c5   : > { %1551 = dma.done.wait (%p1224_p9), %s1008_s9, 128  }
 0x6c6   : > { %1553 = vsyncadd (%p1224_p9), %s1008_s9, 4294967168  ;;  %s1018_s20 = scalar_lea.sflag [#allocation15], %s1007_s22 }
 0x6c7   : > { %1555 = dma.done.wait (%p1224_p9), %s1018_s20, 128  }
 0x6c8   : > { %1557 = vsyncadd (%p1224_p9), %s1018_s20, 4294967168  ;;  %s1975_s20 = sld [smem:[#allocation25_spill]]  ;;  %s1978_s17 = smov %s1564_s18 }
 0x6c9   : > { %s1976_s12 = sld [smem:[#allocation23_spill]] }
 0x6ca   : > { %s1977_s19 = sld [smem:[#allocation26_spill]] }
 0x6ce   : > { %p32_p0 = scmp.ge.s32.totalorder %s1975_s20, 4  }
 0x6cf   : > { %s1979_s18 = smov %s1976_s12 }
 0x6d0   :  { %34 = sbr.rel (!%p32_p0) target bundleno = 15 (0xf), region = 147 }
 0x6d5   :  { %1024 = vsyncpa [#allocation5], 1 }
 0x6d6   :  { %1026 = vsyncpa [#allocation5 + $0x1], 1 }
 0x6d7   :  { %1027 = vsyncpa [#allocation8], 1 }
 0x6d8   :  { %1029 = vsyncpa [#allocation8 + $0x1], 1 }
 0x6d9   :  { %1030 = vsyncpa [#allocation11], 1 }
 0x6da   :  { %1031 = vsyncpa [#allocation6], 1 }
 0x6db   :  { %1033 = vsyncpa [#allocation6 + $0x1], 1 }
 0x6dc   :  { %1034 = vsyncpa [#allocation15], 1 }
 0x6dd   :  { %1036 = vsyncpa [#allocation15 + $0x1], 1 }

</bundles_post_ra>
